<compile_context>
chip_gen: v7x
topology: tpu7x:2x2x1
jax: 0.10.0
libtpu: 0.0.40
codegen_flags: <defaults>
</compile_context>

<pallas_src>
import jax
import jax.numpy as jnp
from jax.experimental import pallas as pl
from jax.experimental.pallas import tpu as pltpu


# --------------------------------------------------------------------------
# Path A: small n  ->  lane-dense collapsed output (B, C, n*n)
# --------------------------------------------------------------------------
def _collapsed_kernel(x_ref, erep_ref, etile_ref, o_ref):
    # x_ref:     (1, tc, N)      input block
    # erep_ref:  (N, N*N)        one-hot expander, erep[m, k] = 1 iff k // N == m
    # etile_ref: (N, N*N)        one-hot expander, etile[m, k] = 1 iff k %  N == m
    # o_ref:     (1, tc, N*N)    lane-dense collapsed output block
    x = x_ref[0]                                                        # (tc, N)
    # i-factor: xi[c, k] = x[c, k // N]   (repeat pattern, via MXU expander)
    xi = jnp.dot(x, erep_ref[...], preferred_element_type=jnp.float32)  # (tc, N*N)
    # j-factor: xj[c, k] = x[c, k %  N]   (tile pattern, via MXU expander)
    xj = jnp.dot(x, etile_ref[...], preferred_element_type=jnp.float32)
    # one VPU multiply per output vreg, stored lane-dense
    o_ref[0] = (xi * xj).astype(o_ref.dtype)


def _choose_tc(C, bytes_per_channel, target_bytes=2 * 1024 * 1024):
    """Largest channel tile (divisor of C, multiple of 8 or == C) within budget."""
    if C * bytes_per_channel <= target_bytes:
        return C
    cap = max(1, target_bytes // bytes_per_channel)
    tc = (min(C, cap) // 8) * 8
    while tc >= 8:
        if C % tc == 0:
            return tc
        tc -= 8
    return C  # fallback: one block per batch step (still correct)


def _l_mult_collapsed(x, B, C, N, itemsize):
    NN = N * N
    tc = _choose_tc(C, NN * itemsize)

    # One-hot layout expanders (tiny: N x N*N), fetched into VMEM once.
    eye = jnp.eye(N, dtype=x.dtype)
    e_rep = jnp.repeat(eye, N, axis=1)   # (N, NN): picks x[c, k // N]
    e_tile = jnp.tile(eye, (1, N))       # (N, NN): picks x[c, k %  N]

    flat = pl.pallas_call(
        _collapsed_kernel,
        out_shape=jax.ShapeDtypeStruct((B, C, NN), x.dtype),
        grid_spec=pltpu.PrefetchScalarGridSpec(
            num_scalar_prefetch=0,
            grid=(B, C // tc),
            in_specs=[
                pl.BlockSpec((1, tc, N), lambda b, c: (b, c, 0)),
                pl.BlockSpec((N, NN), lambda b, c: (0, 0)),
                pl.BlockSpec((N, NN), lambda b, c: (0, 0)),
            ],
            out_specs=pl.BlockSpec((1, tc, NN), lambda b, c: (b, c, 0)),
        ),
        compiler_params=pltpu.CompilerParams(
            dimension_semantics=("parallel", "parallel"),
            vmem_limit_bytes=64 * 1024 * 1024,
        ),
        cost_estimate=pl.CostEstimate(
            flops=B * C * NN + 4 * B * C * N * NN,
            transcendentals=0,
            bytes_accessed=(B * C * N + 2 * N * NN + B * C * NN) * itemsize,
        ),
    )(x, e_rep, e_tile)

    # Contiguous split of the last dim: free (no data movement).
    return flat.reshape(B, C, N, N)


# --------------------------------------------------------------------------
# Path B: large n  ->  4-D output, tiled over channels and the i axis
# --------------------------------------------------------------------------
def _tiled_kernel(x_ref, o_ref):
    # x_ref: (1, tc, N)   (same block for every i step -> fetched once)
    # o_ref: (1, tc, ti, N)
    ti = o_ref.shape[2]
    i0 = pl.multiple_of(pl.program_id(2) * ti, ti)
    xj = x_ref[0]                              # (tc, N)   j-factor, lane vector
    xi = x_ref[0, :, pl.ds(i0, ti)]            # (tc, ti)  i-factor slice for this tile
    # rank-1 broadcast multiply on the VPU; each broadcast emitted once per tile
    o_ref[0] = (xi[:, :, None] * xj[:, None, :]).astype(o_ref.dtype)


def _choose_ti(N, itemsize, target_bytes=1 * 1024 * 1024):
    """Largest i tile (divisor of N, multiple of 8 or == N) within budget."""
    cap = max(8, target_bytes // (N * itemsize))
    ti = (min(N, cap) // 8) * 8
    while ti >= 8:
        if N % ti == 0:
            return ti
        ti -= 8
    return N


def _l_mult_tiled(x, B, C, N, itemsize):
    ti = _choose_ti(N, itemsize)
    tc = _choose_tc(C, ti * N * itemsize)
    return pl.pallas_call(
        _tiled_kernel,
        out_shape=jax.ShapeDtypeStruct((B, C, N, N), x.dtype),
        grid_spec=pltpu.PrefetchScalarGridSpec(
            num_scalar_prefetch=0,
            grid=(B, C // tc, N // ti),
            in_specs=[pl.BlockSpec((1, tc, N), lambda b, c, i: (b, c, 0))],
            out_specs=pl.BlockSpec((1, tc, ti, N), lambda b, c, i: (b, c, i, 0)),
        ),
        compiler_params=pltpu.CompilerParams(
            dimension_semantics=("parallel", "parallel", "parallel"),
            vmem_limit_bytes=64 * 1024 * 1024,
        ),
        cost_estimate=pl.CostEstimate(
            flops=B * C * N * N,
            transcendentals=0,
            bytes_accessed=(B * C * N + B * C * N * N) * itemsize,
        ),
    )(x)


# --------------------------------------------------------------------------
# Public wrapper (forward pass of L_Mult_Layer)
# --------------------------------------------------------------------------
def l_mult_layer(x):
    """x: [B, C, N] float array -> [B, C, N, N] with out[b,c,i,j] = x[b,c,i]*x[b,c,j]."""
    B, C, N = x.shape
    itemsize = x.dtype.itemsize
    if N <= 64:
        return _l_mult_collapsed(x, B, C, N, itemsize)
    return _l_mult_tiled(x, B, C, N, itemsize)


if __name__ == "__main__":
    key = jax.random.PRNGKey(0)
    B, C, N = 2, 4, 16
    x = jax.random.normal(key, (B, C, N), dtype=jnp.float32)

    out = l_mult_layer(x)
    out = jax.block_until_ready(out)

    # Reference (pure JAX), mirrors torch.unsqueeze(x,3) @ torch.unsqueeze(x,2).
    ref = jnp.matmul(x[:, :, :, None], x[:, :, None, :])
    assert out.shape == (B, C, N, N)
    assert jnp.allclose(out, ref, atol=1e-6, rtol=1e-6)

    print("KERNEL_OK")
</pallas_src>

<mosaic_0001>
module attributes {stable_mosaic.version = 11 : i64} {
  func.func @_collapsed_kernel(%arg0: i32, %arg1: i32, %arg2: memref<1x4x16xf32, #tpu.memory_space<vmem>>, %arg3: memref<16x256xf32, #tpu.memory_space<vmem>>, %arg4: memref<16x256xf32, #tpu.memory_space<vmem>>, %arg5: memref<1x4x256xf32, #tpu.memory_space<vmem>>) attributes {dimension_semantics = [#tpu.dimension_semantics<parallel>, #tpu.dimension_semantics<parallel>], iteration_bounds = array<i64: 2, 1>, scalar_prefetch = 0 : i64, scratch_operands = 0 : i64, tpu.core_type = #tpu.core_type<tc>, window_params = [{transform_indices = @transform_0, window_bounds = array<i64: 1, 4, 16>}, {pipeline_mode = #tpu.pipeline_mode<synchronous>, transform_indices = @transform_1, window_bounds = array<i64: 16, 256>}, {pipeline_mode = #tpu.pipeline_mode<synchronous>, transform_indices = @transform_2, window_bounds = array<i64: 16, 256>}, {transform_indices = @transform_3, window_bounds = array<i64: 1, 4, 256>}]} {
    %c0 = arith.constant 0 : index
    %c0_0 = arith.constant 0 : index
    %c0_1 = arith.constant 0 : index
    %0 = vector.load %arg2[%c0, %c0_0, %c0_1] : memref<1x4x16xf32, #tpu.memory_space<vmem>>, vector<1x4x16xf32>
    %1 = vector.shape_cast %0 : vector<1x4x16xf32> to vector<4x16xf32>
    %c0_2 = arith.constant 0 : index
    %c0_3 = arith.constant 0 : index
    %2 = vector.load %arg3[%c0_2, %c0_3] : memref<16x256xf32, #tpu.memory_space<vmem>>, vector<16x256xf32>
    %cst = arith.constant dense<0.000000e+00> : vector<4x256xf32>
    %3 = tpu.matmul %1, %2, %cst {dimension_numbers = #tpu.dot_dimension_numbers<[1], [0], [0], [1], [0, 0, 1, 1], [], []>} : vector<4x16xf32>, vector<16x256xf32>, vector<4x256xf32> -> vector<4x256xf32>
    %c0_4 = arith.constant 0 : index
    %c0_5 = arith.constant 0 : index
    %4 = vector.load %arg4[%c0_4, %c0_5] : memref<16x256xf32, #tpu.memory_space<vmem>>, vector<16x256xf32>
    %cst_6 = arith.constant dense<0.000000e+00> : vector<4x256xf32>
    %5 = tpu.matmul %1, %4, %cst_6 {dimension_numbers = #tpu.dot_dimension_numbers<[1], [0], [0], [1], [0, 0, 1, 1], [], []>} : vector<4x16xf32>, vector<16x256xf32>, vector<4x256xf32> -> vector<4x256xf32>
    %6 = arith.mulf %3, %5 : vector<4x256xf32>
    %c0_7 = arith.constant 0 : index
    %c0_8 = arith.constant 0 : index
    %c0_9 = arith.constant 0 : index
    %7 = vector.load %arg5[%c0_7, %c0_8, %c0_9] : memref<1x4x256xf32, #tpu.memory_space<vmem>>, vector<1x4x256xf32>
    %8 = vector.shape_cast %7 : vector<1x4x256xf32> to vector<4x256xf32>
    %9 = vector.shape_cast %6 : vector<4x256xf32> to vector<1x4x256xf32>
    tpu.vector_store %arg5[%c0_7, %c0_8, %c0_9], %9 {strides = array<i32>} : memref<1x4x256xf32, #tpu.memory_space<vmem>>, vector<1x4x256xf32>,
    return
  }
  func.func @transform_0(%arg0: i32, %arg1: i32) -> (i32, i32, i32) {
    %c0_i32 = arith.constant 0 : i32
    %c0_i32_0 = arith.constant 0 : i32
    return %arg0, %arg1, %c0_i32 : i32, i32, i32
  }
  func.func @transform_1(%arg0: i32, %arg1: i32) -> (i32, i32) {
    %c0_i32 = arith.constant 0 : i32
    %c0_i32_0 = arith.constant 0 : i32
    %c0_i32_1 = arith.constant 0 : i32
    return %c0_i32, %c0_i32_0 : i32, i32
  }
  func.func @transform_2(%arg0: i32, %arg1: i32) -> (i32, i32) {
    %c0_i32 = arith.constant 0 : i32
    %c0_i32_0 = arith.constant 0 : i32
    %c0_i32_1 = arith.constant 0 : i32
    return %c0_i32, %c0_i32_0 : i32, i32
  }
  func.func @transform_3(%arg0: i32, %arg1: i32) -> (i32, i32, i32) {
    %c0_i32 = arith.constant 0 : i32
    %c0_i32_0 = arith.constant 0 : i32
    return %arg0, %arg1, %c0_i32 : i32, i32, i32
  }
}

</mosaic_0001>

<bundles_post_ra>
// kernel: tpu_custom_call.1
= control target key start
LH: loop header
LB: loop body
LE: loop exit
PB: predicated region body
PF: predicated region fallthrough
CT: control target
= control target key end

     0   :  { %8 = vsyncpa [#allocation3], 0  ;;  %s1079_s0 = inlined_call_operand.hbm [shape: f32[2,4,16], index: 0, kind: input, shape index: {}]   ;;  %s1080_s1 = inlined_call_operand.hbm [shape: f32[16,256], index: 1, kind: input, shape index: {}]   ;;  %s1081_s2 = inlined_call_operand.hbm [shape: f32[16,256], index: 2, kind: input, shape index: {}]   ;;  %s1082_s3 = inlined_call_operand.hbm [shape: f32[2,4,256], index: 3, kind: output, shape index: {}]  }
   0x1   :  { %10 = vsyncpa [#allocation3 + $0x1], 0 }
   0x2   :  { %11 = vsyncpa [#allocation6], 0 }
   0x3   :  { %12 = vsyncpa [#allocation4], 0 }
   0x4   :  { %14 = vsyncpa [#allocation4 + $0x1], 0  ;;  %s828_s12 = smov 0   ;;  %s830_s13 = smov 0  }
   0x5   :  { %s832_s14 = smov 0   ;;  %s834_s15 = smov 0  }
   0x6   :  { %s836_s16 = smov 0   ;;  %s838_s17 = smov 0  }
   0x7 LB: > { %s512_s18 = sadd.s32 4294967295, %s799_s17   ;;  %s513_s19 = sadd.s32 4294967294, %s799_s17   ;;  %s799_s17 = sphi %s838_s17, %s20_s17   ;;  %s795_s16 = sphi %s836_s16, %s1104_s16   ;;  %s791_s15 = sphi %s834_s15, %s1103_s15   ;;  %s787_s14 = sphi %s832_s14, %s1102_s14   ;;  %s783_s13 = sphi %s830_s13, %s1101_s13   ;;  %s779_s12 = sphi %s828_s12, %s1100_s12  }
   0x8   : > { %p54_p0 = scmp.ne.s32.totalorder %s783_s13, %s779_s12  ;;  %p862_p1 = scmp.eq.s32.totalorder %s512_s18, 0 }
   0x9   : > { %p866_p2 = scmp.eq.s32.totalorder %s512_s18, 1  ;;  %p128_p3 = scmp.eq.s32.totalorder %s513_s19, 1 }
   0xa   : > { %s1087_s20 = scalar_select %p862_p1, 1, 0 }
   0xb   : > { %p872_p4 = por %p862_p1, %p54_p0  ;;  %p514_p5 = scmp.ge.s32.totalorder %s799_s17, 1 }
   0xc   : > { %p877_p6 = por %p128_p3, %p54_p0  ;;  %p135_p7 = scmp.lt.s32.totalorder %s799_s17, 3 }
   0xd   : > { %s1089_s22 = scalar_select %p872_p4, 1, 0 }
   0xe   : > { %s1090_s23 = scalar_select %p877_p6, 1, 0 }
   0xf   : > { %p882_p8 = pnand %p514_p5, %p135_p7  ;;  %s801_s25 = smov [#allocation5]  }
  0x10   : > { %s147_s26 = sshll.u32 %s801_s25, 4  ;;  %s802_s28 = smov [#allocation7]   ;;  %s886_s26 = int_to_ptr.vmem [resolvable:$true] %s147_s26 }
  0x11   : > { %p553_p9 = pneg %p882_p8  ;;  %s160_s29 = sshll.u32 %s802_s28, 4  ;;  %s897_s29 = int_to_ptr.vmem [resolvable:$true] %s160_s29 }
  0x12   : > { %s627_s5 = scalar_lea.hbm %s1080_s1, 512 }
  0x13   : > { %p893_p11 = pnand %p553_p9, %p862_p1  ;;  %p628_p12 = scmp.ne.s32.totalorder %s1080_s1, %s627_s5 }
  0x14   : > { %p634_p5 = scmp.lt.u32.totalorder %s627_s5, %s1080_s1 }
  0x15   : > { %p629_p13 = pneg %p893_p11 }
  0x17   : > { %p630_p0 = pnand %p629_p13, %p628_p12 }
  0x19   : > { %p631_p3 = pneg %p630_p0 }
  0x1b   : > { %p636_p7 = pnand %p634_p5, %p631_p3 }
  0x1d   : > { %639 = shalt.err (!%p636_p7)
}
  0x1e   : > { %s640_s10 = scalar_lea.vmem %s886_s26, 512  ;;  %p648_p1 = scmp.lt.s32.totalorder %s886_s26, %s886_s26 }
  0x1f   : > { %p641_p9 = scmp.ne.s32.totalorder %s886_s26, %s640_s10  ;;  %p649_p12 = scmp.lt.s32.totalorder %s640_s10, %s640_s10 }
  0x21   : > { %p643_p10 = pnand %p641_p9, %p629_p13  ;;  %p650_p0 = por %p649_p12, %p648_p1 }
  0x23   : > { %p644_p6 = pneg %p643_p10 }
  0x25   : > { %p651_p4 = pnand %p650_p0, %p644_p6 }
  0x27   : > { %654 = shalt.err (!%p651_p4)
}
  0x28   : > { %s803_s11 = smov 256   ;;  %s804_s18 = smov 16  }
  0x29   : > { %556 = dma.hbm_to_vmem [thread:$0]  (!%p893_p11), %s1080_s1, 512, %s886_s26, [#allocation6], %s803_s11, %s803_s11, %s804_s18  }
  0x2a   : > { %s655_s4 = scalar_lea.hbm %s1081_s2, 512 }
  0x2b   : > { %p656_p1 = scmp.ne.s32.totalorder %s1081_s2, %s655_s4  ;;  %p662_p10 = scmp.lt.u32.totalorder %s655_s4, %s1081_s2 }
  0x2d   : > { %p658_p4 = pnand %p656_p1, %p629_p13 }
  0x2f   : > { %p659_p6 = pneg %p658_p4 }
  0x31   : > { %p664_p3 = pnand %p662_p10, %p659_p6 }
  0x33   : > { %667 = shalt.err (!%p664_p3)
}
  0x34   : > { %s668_s26 = scalar_lea.vmem %s897_s29, 512  ;;  %p676_p12 = scmp.lt.s32.totalorder %s897_s29, %s897_s29 }
  0x35   : > { %p669_p5 = scmp.ne.s32.totalorder %s897_s29, %s668_s26  ;;  %p677_p0 = scmp.lt.s32.totalorder %s668_s26, %s668_s26 }
  0x37   : > { %p671_p7 = pnand %p669_p5, %p629_p13  ;;  %p678_p1 = por %p677_p0, %p676_p12 }
  0x39   : > { %p672_p9 = pneg %p671_p7 }
  0x3b   : > { %p679_p4 = pnand %p678_p1, %p672_p9 }
  0x3d   : > { %682 = shalt.err (!%p679_p4)
}
  0x3e   : > { %559 = dma.hbm_to_vmem [thread:$0]  (!%p893_p11), %s1081_s2, 512, %s897_s29, [#allocation6], %s803_s11, %s803_s11, %s804_s18  }
  0x3f   : > { %s32_s19 = sadd.s32 1, %s795_s16  ;;  %s41_s25 = sadd.s32 1, %s787_s14 }
  0x40   : > { %p34_p13 = scmp.ge.s32.totalorder %s32_s19, 2  ;;  %p48_p6 = scmp.ne.s32.totalorder %s787_s14, %s783_s13 }
  0x41   : > { %p49_p10 = scmp.eq.s32.totalorder %s799_s17, 0  ;;  %p570_p3 = scmp.lt.s32.totalorder %s799_s17, 2 }
  0x42   : > { %s1106_s19 = smov (%p34_p13, %s32_s19), 0  ;;  %p961_p7 = por %p866_p2, %p48_p6 }
  0x43   : > { %p50_p5 = por %p49_p10, %p48_p6  ;;  %s36_s28 = ssub.s32 %s795_s16, %s1106_s19 }
  0x44   : > { %s1093_s27 = scalar_select %p961_p7, 1, 0 }
  0x45   : > { %s174_s30 = sand.u32 1, %s787_s14   ;;  %p39_p9 = scmp.eq.s32.totalorder %s36_s28, 0 }
  0x46   : > { %s518_s29 = sshll.u32 %s174_s30, 2  ;;  %s519_s11 = sshll.u32 %s795_s16, 6 }
  0x47   : > { %s970_s18 = scalar_select %p39_p9, %s787_s14, %s41_s25  }
  0x48   : > { %s975_s6 = scalar_lea.hbm %s1079_s0, %s519_s11  ;;  %s178_s21 = scalar_lea.vmem [#allocation2], %s518_s29 }
  0x49   : > { %s186_s7 = sshll.u32 %s178_s21, 4  ;;  %p979_p2 = pnand %p570_p3, %p50_p5  ;;  %s983_s7 = int_to_ptr.vmem [resolvable:$true] %s186_s7 }
  0x4a   : > { %s175_s26 = scalar_lea.sflag [#allocation3], %s174_s30  ;;  %s683_s9 = scalar_lea.hbm %s975_s6, 64 }
  0x4b   : > { %p684_p11 = scmp.ne.s32.totalorder %s975_s6, %s683_s9  ;;  %p685_p12 = pneg %p979_p2 }
  0x4c   : > { %s688_s28 = scalar_lea.hbm %s1079_s0, 128  ;;  %p689_p4 = scmp.lt.u32.totalorder %s975_s6, %s1079_s0 }
  0x4d   : > { %p686_p0 = pnand %p685_p12, %p684_p11  ;;  %p690_p13 = scmp.lt.u32.totalorder %s688_s28, %s683_s9 }
  0x4e   : > { %p692_p10 = scmp.lt.u32.totalorder %s683_s9, %s975_s6 }
  0x4f   : > { %p687_p1 = pneg %p686_p0  ;;  %p691_p6 = por %p690_p13, %p689_p4 }
  0x51   : > { %p693_p3 = por %p692_p10, %p691_p6 }
  0x53   : > { %p694_p5 = pnand %p693_p3, %p687_p1 }
  0x55   : > { %697 = shalt.err (!%p694_p5)
}
  0x56   : > { %s698_s30 = scalar_lea.vmem %s983_s7, 64  ;;  %s805_s4 = smov [#allocation2]  }
  0x57   : > { %p699_p9 = scmp.ne.s32.totalorder %s983_s7, %s698_s30  ;;  %s703_s5 = sshll.u32 %s805_s4, 4  ;;  %s704_s5 = int_to_ptr.vmem [resolvable:$false] %s703_s5 }
  0x58   : > { %s705_s21 = scalar_lea.vmem %s704_s5, 128  ;;  %p706_p7 = scmp.lt.s32.totalorder %s983_s7, %s704_s5 }
  0x59   : > { %p701_p11 = pnand %p699_p9, %p685_p12  ;;  %p707_p4 = scmp.lt.s32.totalorder %s705_s21, %s698_s30 }
  0x5b   : > { %p702_p0 = pneg %p701_p11  ;;  %p708_p13 = por %p707_p4, %p706_p7 }
  0x5d   : > { %p709_p6 = pnand %p708_p13, %p702_p0 }
  0x5f   : > { %712 = shalt.err (!%p709_p6)
}
  0x60   : > { %563 = dma.hbm_to_vmem [thread:$0]  (!%p979_p2), %s975_s6, 64, %s983_s7, %s175_s26  }
  0x61   : > { %195 = sbr.rel (%p882_p8) target bundleno = 348 (0x15c), region = 32  ;;  %s1013_s9 = sand.u32 (!%p882_p8), 1, %s783_s13  }
  0x62   : > { %s521_s10 = sshll.u32 (!%p882_p8), %s1013_s9, 2  ;;  %s198_s25 = scalar_lea.sflag (!%p882_p8), [#allocation3], %s1013_s9 }
  0x63   : > { %s201_s28 = scalar_lea.vmem (!%p882_p8), [#allocation2], %s521_s10  ;;  %p1095_p7 = scmp.ne.s32.totalorder (!%p882_p8), %s1089_s22, 0 }
  0x68   : > { %766 = dma.done.wait (%p1095_p7), %s198_s25, 64  }
  0x69   : > { %768 = vsyncadd (%p1095_p7), %s198_s25, 4294967232  ;;  %p1096_p12 = scmp.ne.s32.totalorder %s1087_s20, 0 }
  0x6b   : > { %770 = dma.done.wait (%p1096_p12), [#allocation6], 1024  }
  0x6c   : > { %772 = vsyncadd (%p1096_p12), [#allocation6], 4294966272  ;;  %v806_v0 = vmov 0.0   ;;  %v234_v1 = vld [vmem:[#allocation5 + $0x8] sm:$0xff]  ;;  %v236_v2 = vld [vmem:[#allocation5 + $0x18] sm:$0xff]  ;;  %vm237_vm0 = vcmask 130048  }
  0x6d   : > { %305 = vmatprep.mubr.f32.mxu0 %v806_v0  ;;  %380 = vmatprep.mubr.f32.mxu1 %v806_v0  ;;  %v313_v3 = vld [vmem:[#allocation7 + $0x8] sm:$0xff]  ;;  %v533_v4 = vpack.c.bf16 %v236_v2, %v234_v1  ;;  %v315_v5 = vld [vmem:[#allocation7 + $0x18] sm:$0xff]  ;;  %v233_v6 = vld [vmem:[#allocation5] sm:$0xff]  ;;  %s524_s20 = sshll.u32 %s1013_s9, 3  ;;  %s532_s22 = sshll.u32 %s791_s15, 7 }
  0x6e   : > { %v235_v7 = vld [vmem:[#allocation5 + $0x10] sm:$0xff]  ;;  %v537_v8 = vpack.c.bf16 %v315_v5, %v313_v3  ;;  %v312_v10 = vld [vmem:[#allocation7] sm:$0xff]  ;;  %v232_v13 = vld [vmem:[%s201_s28] sm:$0xf]  ;;  %s231_s24 = scalar_lea.vmem [#allocation8], %s524_s20  ;;  %s1030_s26 = scalar_lea.hbm %s1082_s3, %s532_s22 }
  0x6f   : > { %v535_v9 = vpack.c.bf16 %v235_v7, %v233_v6  ;;  %v314_v11 = vld [vmem:[#allocation7 + $0x10] sm:$0xff]  ;;  %534 = vmatprep.subr.bf16.mxu0 %v533_v4  ;;  %s411_s6 = sshll.u32 %s231_s24, 4  ;;  %s395_s29 = scalar_lea.sflag [#allocation4], %s1013_s9  ;;  %s1032_s6 = int_to_ptr.vmem [resolvable:$true] %s411_s6 }
  0x70   : > { %v539_v12 = vpack.c.bf16 %v314_v11, %v312_v10  ;;  %538 = vmatprep.subr.bf16.mxu1 %v537_v8  ;;  %s713_s11 = scalar_lea.vmem %s1032_s6, 128  ;;  %p1097_p2 = scmp.ne.s32.totalorder %s1093_s27, 0 }
  0x71   : > { %536 = vmatpush1.bf16.msra.mxu0 %v535_v9  ;;  %p714_p8 = scmp.ne.s32.totalorder %s1032_s6, %s713_s11  ;;  %s807_s15 = smov [#allocation8]  }
  0x72   : > { %540 = vmatpush1.bf16.msra.mxu1 %v539_v12  ;;  %s717_s30 = sshll.u32 %s807_s15, 4  ;;  %s718_s30 = int_to_ptr.vmem [resolvable:$false] %s717_s30 }
  0x73   : > { %p715_p1 = pnand %p714_p8, %p1097_p2  ;;  %s719_s4 = scalar_lea.vmem %s718_s30, 256 }
  0x74   : > { %525 = vmatmul.mubr.msk.f32.vlgmr.msra.gmra.mrb[0].mxu0 %vm237_vm0, %v232_v13  ;;  %p720_p3 = scmp.lt.s32.totalorder %s1032_s6, %s718_s30  ;;  %p721_p5 = scmp.lt.s32.totalorder %s719_s4, %s713_s11 }
  0x75   : > { %526 = vmatmul.mubr.msk.f32.vlgmr.msra.gmra.mrb[0].mxu1 %vm237_vm0, %v232_v13  ;;  %p716_p10 = pneg %p715_p1 }
  0x76   : > { %p722_p9 = por %p721_p5, %p720_p3 }
  0x78   : > { %p723_p11 = pnand %p722_p9, %p716_p10 }
 0x147   : > { %v307_v14 = vpop.f32.mrb[0].mxu0 }
 0x148   : > { %v382_v15 = vpop.f32.mrb[0].mxu1  ;;  %v309_v16 = vpop.f32.mrb[1].mxu0 }
 0x149   : > { %v387_v17 = vmul.f32 %v382_v15, %v307_v14  ;;  %v384_v18 = vpop.f32.mrb[1].mxu1 }
 0x14a   : > { %v388_v19 = vmul.f32 %v384_v18, %v309_v16 }
 0x14c   : > { %v391_v20 = vcombine.low %v387_v17, %v388_v19 }
 0x14e   : > { %393 = vst [vmem:[%s231_s24] sm:$0xff] %v391_v20 }
 0x14f   : > { %726 = shalt.err (!%p723_p11)
}
 0x150   : > { %s727_s5 = scalar_lea.hbm %s1030_s26, 128  ;;  %s731_s10 = scalar_lea.hbm %s1082_s3, 256 }
 0x151   : > { %p728_p0 = scmp.ne.s32.totalorder %s1030_s26, %s727_s5  ;;  %p732_p6 = scmp.lt.u32.totalorder %s1030_s26, %s1082_s3 }
 0x152   : > { %p733_p7 = scmp.lt.u32.totalorder %s731_s10, %s727_s5  ;;  %p735_p8 = scmp.lt.u32.totalorder %s727_s5, %s1030_s26 }
 0x153   : > { %p729_p4 = pnand %p728_p0, %p1097_p2 }
 0x154   : > { %p734_p12 = por %p733_p7, %p732_p6 }
 0x155   : > { %p730_p13 = pneg %p729_p4 }
 0x156   : > { %p736_p1 = por %p735_p8, %p734_p12 }
 0x158   : > { %p737_p10 = pnand %p736_p1, %p730_p13 }
 0x15a   : > { %740 = shalt.err (!%p737_p10)
}
 0x15b   : > { %551 = dma.vmem_to_hbm [thread:$0]  (%p1097_p2), %s1032_s6, 128, %s1030_s26, %s395_s29  }
 0x15c PF: > { %s423_s20 = sand.u32 1, %s779_s12   ;;  %p1098_p3 = scmp.ne.s32.totalorder %s1090_s23, 0 }
 0x15d   : > { %p1099_p5 = scmp.ge.s32.totalorder %s799_s17, 2  ;;  %s424_s22 = scalar_lea.sflag [#allocation4], %s423_s20 }
 0x15f   : > { %p565_p9 = pnand %p1099_p5, %p1098_p3 }
 0x161   : > { %774 = dma.done.wait (!%p565_p9), %s424_s22, 128  }
 0x162   : > { %776 = vsyncadd (!%p565_p9), %s424_s22, 4294967168  ;;  %s20_s17 = sadd.s32 1, %s799_s17   ;;  %s1100_s12 = smov %s783_s13 }
 0x163   : > { %p17_p11 = scmp.ge.s32.totalorder %s20_s17, 4   ;;  %s1101_s13 = smov %s787_s14 }
 0x164   : > { %s1102_s14 = smov %s970_s18  ;;  %s1103_s15 = smov %s795_s16 }
 0x165   : > { %s1104_s16 = smov %s1106_s19  ;;  %19 = sbr.rel (!%p17_p11) target bundleno = 7 (0x7), region = 85 }
 0x16c   :  { %429 = vsyncpa [#allocation3], 1 }
 0x16d   :  { %431 = vsyncpa [#allocation3 + $0x1], 1 }
 0x16e   :  { %432 = vsyncpa [#allocation6], 1 }
 0x16f   :  { %433 = vsyncpa [#allocation4], 1 }
 0x170   :  { %435 = vsyncpa [#allocation4 + $0x1], 1 }

</bundles_post_ra>
